<compile_context>
chip_gen: v5e
topology: v5e:2x2
jax: 0.10.0
libtpu: 0.0.40
codegen_flags: <defaults>
</compile_context>

<pallas_src>
import jax
import jax.numpy as jnp
from jax.experimental import pallas as pl
from jax.experimental.pallas import tpu as pltpu

# OGB get_atom_feature_dims()
FULL_ATOM_FEATURE_DIMS = [119, 5, 12, 12, 10, 6, 6, 2, 2]
VPAD = 128  # every vocab padded to 128 lanes


def atom_embed_kernel(idx_ref, tab_ref, out_ref):
    # idx_ref: [TILE_N, F]       i32
    # tab_ref: [F*VPAD, D]       f32   (resident across the whole grid)
    # out_ref: [TILE_N, D]       f32
    tile_n, num_feat = idx_ref.shape
    k_dim, _ = tab_ref.shape
    vpad = k_dim // num_feat

    # Hoisted: one [TILE_N, VPAD] iota per tile (JAX does not CSE broadcast_in_dim).
    iota = jax.lax.broadcasted_iota(jnp.int32, (tile_n, vpad), 1)
    idx = idx_ref[...]

    # Per-feature one-hots, concatenated along lanes at 128-aligned boundaries
    # into a single [TILE_N, F*VPAD] operand -> one fused K=F*128 MXU matmul.
    # (Indices < 0 or >= vocab silently produce a zero embedding; PyTorch
    #  nn.Embedding would raise instead.)
    parts = [(iota == idx[:, f:f + 1]).astype(tab_ref.dtype) for f in range(num_feat)]
    onehot = jnp.concatenate(parts, axis=1)                      # [TILE_N, F*VPAD]

    out_ref[...] = jnp.dot(
        onehot, tab_ref[...], preferred_element_type=jnp.float32
    ).astype(out_ref.dtype)


def my_atom_encoder(x, tables_flat, k, tile_n=512):
    """x: [N, k + F] float; tables_flat: [F*VPAD, D] f32. Returns [N, k + D] f32."""
    n_rows, in_dim = x.shape
    k_dim, emb_d = tables_flat.shape
    num_feat = in_dim - k
    assert k_dim == num_feat * VPAD, (k_dim, num_feat)

    xc = x[:, :k].astype(jnp.float32)                 # passthrough columns (hstack left half)
    # round-to-nearest before the integer cast (safer than trunc if x went
    # through a float pipeline); equals .long() for clean integer codes.
    idx = jnp.rint(x[:, k:]).astype(jnp.int32)        # [N, F]

    # Row tiling: TILE_N multiple of 8; pad N so every block is full (padded
    # rows use index 0 and are sliced off afterwards).
    tile_n = max(8, min(tile_n, ((n_rows + 7) // 8) * 8))
    n_pad = pl.cdiv(n_rows, tile_n) * tile_n
    if n_pad != n_rows:
        idx = jnp.pad(idx, ((0, n_pad - n_rows), (0, 0)))
    grid = (n_pad // tile_n,)

    emb = pl.pallas_call(
        atom_embed_kernel,
        out_shape=jax.ShapeDtypeStruct((n_pad, emb_d), jnp.float32),
        grid=grid,
        in_specs=[
            pl.BlockSpec((tile_n, num_feat), lambda i: (i, 0)),   # per-tile indices
            pl.BlockSpec((k_dim, emb_d), lambda i: (0, 0)),       # tables resident (constant block)
        ],
        out_specs=pl.BlockSpec((tile_n, emb_d), lambda i: (i, 0)),  # lane-dense embedding output
        compiler_params=pltpu.CompilerParams(dimension_semantics=("parallel",)),
    )(idx, tables_flat)

    # hstack realized outside the kernel (pure copy, fused by XLA for free).
    return jnp.concatenate([xc, emb[:n_rows]], axis=1)


def init_atom_tables(key, emb_out_dim, vpad=VPAD):
    """Xavier-uniform tables (as in OGB AtomEncoder.__init__), vocab-padded and
    concatenated along the vocab axis into the fused-K layout [F*vpad, D]."""
    tabs = []
    for vocab in FULL_ATOM_FEATURE_DIMS:
        key, sub = jax.random.split(key)
        bound = (6.0 / (vocab + emb_out_dim)) ** 0.5
        w = jax.random.uniform(sub, (vocab, emb_out_dim), jnp.float32, -bound, bound)
        w = jnp.pad(w, ((0, vpad - vocab), (0, 0)))
        tabs.append(w)
    return jnp.concatenate(tabs, axis=0)  # [F*vpad, emb_out_dim]


if __name__ == "__main__":
    key = jax.random.PRNGKey(0)

    # Small, module-consistent shapes (tile_n shrunk so the grid has >1 step).
    N = 24                       # number of atoms / rows
    k = 4                        # continuous columns passed through
    emb_dim = 32                 # total output width
    D = emb_dim - k              # AtomEncoder(emb_dim - k)
    F = len(FULL_ATOM_FEATURE_DIMS)
    in_dim = k + F               # x: [N, k + 9]

    k_tab, k_cont, k_idx = jax.random.split(key, 3)
    tables_flat = init_atom_tables(k_tab, D)          # [F*128, D]

    # Build x as the PyTorch module expects: first k columns continuous,
    # remaining F columns integer categorical codes stored as floats.
    x_cont = jax.random.normal(k_cont, (N, k), dtype=jnp.float32)
    idx_cols = []
    for vocab in FULL_ATOM_FEATURE_DIMS:
        k_idx, sub = jax.random.split(k_idx)
        idx_cols.append(jax.random.randint(sub, (N, 1), 0, vocab))
    x_idx = jnp.concatenate(idx_cols, axis=1).astype(jnp.float32)
    x = jnp.concatenate([x_cont, x_idx], axis=1)      # [N, in_dim]

    out = my_atom_encoder(x, tables_flat, k, tile_n=8)
    out = jax.block_until_ready(out)

    # Pure-JAX reference.
    idx = jnp.rint(x[:, k:]).astype(jnp.int32)
    ref_emb = jnp.zeros((N, D), jnp.float32)
    for f in range(F):
        tab_f = tables_flat[f * VPAD:(f + 1) * VPAD]
        ref_emb = ref_emb + jnp.take(tab_f, idx[:, f], axis=0)
    ref = jnp.concatenate([x[:, :k], ref_emb], axis=1)

    assert out.shape == (N, emb_dim), out.shape
    assert jnp.allclose(out, ref, atol=1e-4, rtol=1e-4), "mismatch vs reference"
    print("KERNEL_OK")
</pallas_src>

<mosaic_0001>
module attributes {stable_mosaic.version = 11 : i64} {
  func.func @atom_embed_kernel(%arg0: i32, %arg1: memref<8x9xi32, #tpu.memory_space<vmem>>, %arg2: memref<1152x28xf32, #tpu.memory_space<vmem>>, %arg3: memref<8x28xf32, #tpu.memory_space<vmem>>) attributes {dimension_semantics = [#tpu.dimension_semantics<parallel>], iteration_bounds = array<i64: 3>, scalar_prefetch = 0 : i64, scratch_operands = 0 : i64, tpu.core_type = #tpu.core_type<tc>, window_params = [{transform_indices = @transform_0, window_bounds = array<i64: 8, 9>}, {pipeline_mode = #tpu.pipeline_mode<synchronous>, transform_indices = @transform_1, window_bounds = array<i64: 1152, 28>}, {transform_indices = @transform_2, window_bounds = array<i64: 8, 28>}]} {
    %0 = tpu.iota {dimensions = array<i32: 1>} : vector<8x128xi32>
    %c0 = arith.constant 0 : index
    %c0_0 = arith.constant 0 : index
    %1 = vector.load %arg1[%c0, %c0_0] : memref<8x9xi32, #tpu.memory_space<vmem>>, vector<8x9xi32>
    %2 = vector.extract_strided_slice %1 {offsets = [0, 0], sizes = [8, 1], strides = [1, 1]} : vector<8x9xi32> to vector<8x1xi32>
    %3 = vector.broadcast %2 : vector<8x1xi32> to vector<8x128xi32>
    %4 = arith.cmpi eq, %0, %3 : vector<8x128xi32>
    %5 = arith.extui %4 : vector<8x128xi1> to vector<8x128xi32>
    %6 = arith.sitofp %5 : vector<8x128xi32> to vector<8x128xf32>
    %7 = vector.extract_strided_slice %1 {offsets = [0, 1], sizes = [8, 1], strides = [1, 1]} : vector<8x9xi32> to vector<8x1xi32>
    %8 = vector.broadcast %7 : vector<8x1xi32> to vector<8x128xi32>
    %9 = arith.cmpi eq, %0, %8 : vector<8x128xi32>
    %10 = arith.extui %9 : vector<8x128xi1> to vector<8x128xi32>
    %11 = arith.sitofp %10 : vector<8x128xi32> to vector<8x128xf32>
    %12 = vector.extract_strided_slice %1 {offsets = [0, 2], sizes = [8, 1], strides = [1, 1]} : vector<8x9xi32> to vector<8x1xi32>
    %13 = vector.broadcast %12 : vector<8x1xi32> to vector<8x128xi32>
    %14 = arith.cmpi eq, %0, %13 : vector<8x128xi32>
    %15 = arith.extui %14 : vector<8x128xi1> to vector<8x128xi32>
    %16 = arith.sitofp %15 : vector<8x128xi32> to vector<8x128xf32>
    %17 = vector.extract_strided_slice %1 {offsets = [0, 3], sizes = [8, 1], strides = [1, 1]} : vector<8x9xi32> to vector<8x1xi32>
    %18 = vector.broadcast %17 : vector<8x1xi32> to vector<8x128xi32>
    %19 = arith.cmpi eq, %0, %18 : vector<8x128xi32>
    %20 = arith.extui %19 : vector<8x128xi1> to vector<8x128xi32>
    %21 = arith.sitofp %20 : vector<8x128xi32> to vector<8x128xf32>
    %22 = vector.extract_strided_slice %1 {offsets = [0, 4], sizes = [8, 1], strides = [1, 1]} : vector<8x9xi32> to vector<8x1xi32>
    %23 = vector.broadcast %22 : vector<8x1xi32> to vector<8x128xi32>
    %24 = arith.cmpi eq, %0, %23 : vector<8x128xi32>
    %25 = arith.extui %24 : vector<8x128xi1> to vector<8x128xi32>
    %26 = arith.sitofp %25 : vector<8x128xi32> to vector<8x128xf32>
    %27 = vector.extract_strided_slice %1 {offsets = [0, 5], sizes = [8, 1], strides = [1, 1]} : vector<8x9xi32> to vector<8x1xi32>
    %28 = vector.broadcast %27 : vector<8x1xi32> to vector<8x128xi32>
    %29 = arith.cmpi eq, %0, %28 : vector<8x128xi32>
    %30 = arith.extui %29 : vector<8x128xi1> to vector<8x128xi32>
    %31 = arith.sitofp %30 : vector<8x128xi32> to vector<8x128xf32>
    %32 = vector.extract_strided_slice %1 {offsets = [0, 6], sizes = [8, 1], strides = [1, 1]} : vector<8x9xi32> to vector<8x1xi32>
    %33 = vector.broadcast %32 : vector<8x1xi32> to vector<8x128xi32>
    %34 = arith.cmpi eq, %0, %33 : vector<8x128xi32>
    %35 = arith.extui %34 : vector<8x128xi1> to vector<8x128xi32>
    %36 = arith.sitofp %35 : vector<8x128xi32> to vector<8x128xf32>
    %37 = vector.extract_strided_slice %1 {offsets = [0, 7], sizes = [8, 1], strides = [1, 1]} : vector<8x9xi32> to vector<8x1xi32>
    %38 = vector.broadcast %37 : vector<8x1xi32> to vector<8x128xi32>
    %39 = arith.cmpi eq, %0, %38 : vector<8x128xi32>
    %40 = arith.extui %39 : vector<8x128xi1> to vector<8x128xi32>
    %41 = arith.sitofp %40 : vector<8x128xi32> to vector<8x128xf32>
    %42 = vector.extract_strided_slice %1 {offsets = [0, 8], sizes = [8, 1], strides = [1, 1]} : vector<8x9xi32> to vector<8x1xi32>
    %43 = vector.broadcast %42 : vector<8x1xi32> to vector<8x128xi32>
    %44 = arith.cmpi eq, %0, %43 : vector<8x128xi32>
    %45 = arith.extui %44 : vector<8x128xi1> to vector<8x128xi32>
    %46 = arith.sitofp %45 : vector<8x128xi32> to vector<8x128xf32>
    %47 = tpu.concatenate %6, %11, %16, %21, %26, %31, %36, %41, %46 in 1 : vector<8x128xf32>, vector<8x128xf32>, vector<8x128xf32>, vector<8x128xf32>, vector<8x128xf32>, vector<8x128xf32>, vector<8x128xf32>, vector<8x128xf32>, vector<8x128xf32> -> vector<8x1152xf32>
    %c0_1 = arith.constant 0 : index
    %c0_2 = arith.constant 0 : index
    %48 = vector.load %arg2[%c0_1, %c0_2] : memref<1152x28xf32, #tpu.memory_space<vmem>>, vector<1152x28xf32>
    %cst = arith.constant dense<0.000000e+00> : vector<8x28xf32>
    %49 = tpu.matmul %47, %48, %cst {dimension_numbers = #tpu.dot_dimension_numbers<[1], [0], [0], [1], [0, 0, 1, 1], [], []>} : vector<8x1152xf32>, vector<1152x28xf32>, vector<8x28xf32> -> vector<8x28xf32>
    %c0_3 = arith.constant 0 : index
    %c0_4 = arith.constant 0 : index
    %50 = vector.load %arg3[%c0_3, %c0_4] : memref<8x28xf32, #tpu.memory_space<vmem>>, vector<8x28xf32>
    tpu.vector_store %arg3[%c0_3, %c0_4], %49 {strides = array<i32>} : memref<8x28xf32, #tpu.memory_space<vmem>>, vector<8x28xf32>,
    return
  }
  func.func @transform_0(%arg0: i32) -> (i32, i32) {
    %c0_i32 = arith.constant 0 : i32
    %c0_i32_0 = arith.constant 0 : i32
    return %arg0, %c0_i32 : i32, i32
  }
  func.func @transform_1(%arg0: i32) -> (i32, i32) {
    %c0_i32 = arith.constant 0 : i32
    %c0_i32_0 = arith.constant 0 : i32
    %c0_i32_1 = arith.constant 0 : i32
    return %c0_i32, %c0_i32_0 : i32, i32
  }
  func.func @transform_2(%arg0: i32) -> (i32, i32) {
    %c0_i32 = arith.constant 0 : i32
    %c0_i32_0 = arith.constant 0 : i32
    return %arg0, %c0_i32 : i32, i32
  }
}

</mosaic_0001>

<bundles_post_ra>
// kernel: tpu_custom_call.1
= control target key start
LH: loop header
LB: loop body
LE: loop exit
PB: predicated region body
PF: predicated region fallthrough
CT: control target
= control target key end

     0   :  { %7 = vsyncpa [#allocation3], 0  ;;  %s1300_s0 = inlined_call_operand.vmem [shape: s32[24,9], index: 0, kind: input, shape index: {}]   ;;  %s1301_s1 = inlined_call_operand.vmem [shape: f32[1152,28], index: 1, kind: input, shape index: {}]   ;;  %s1302_s2 = inlined_call_operand.hbm [shape: f32[24,28], index: 2, kind: output, shape index: {}]  }
   0x1   :  { %9 = vsyncpa [#allocation3 + $0x1], 0  ;;  %s772_s9 = smov 0   ;;  %s774_s10 = smov 0  }
   0x2   :  { %s776_s11 = smov 0   ;;  %s778_s12 = smov 0  }
   0x3 LB: > { %s793_s13 = sadd.s32 4294967295, %s745_s12   ;;  %s597_s14 = sadd.s32 4294967294, %s745_s12   ;;  %s745_s12 = sphi %s778_s12, %s1308_s12   ;;  %s741_s11 = sphi %s776_s11, %s1307_s11   ;;  %s737_s10 = sphi %s774_s10, %s1306_s10   ;;  %s733_s9 = sphi %s772_s9, %s1305_s9  }
   0x4   : > { %s797_s15 = sadd.s32 1, %s745_s12   ;;  %s69_s16 = sadd.s32 1, %s741_s11 }
   0x5   : > { %s66_s17 = ssub.s32 %s745_s12, %s797_s15  ;;  %p79_p0 = scmp.ne.s32.totalorder %s741_s11, %s737_s10 }
   0x6   : > { %p67_p1 = scmp.eq.s32.totalorder %s66_s17, 0  ;;  %p80_p2 = scmp.eq.s32.totalorder %s793_s13, 2 }
   0x7   : > { %p85_p3 = scmp.ne.s32.totalorder %s737_s10, %s733_s9  ;;  %p86_p4 = scmp.eq.s32.totalorder %s597_s14, 2 }
   0x8   : > { %s808_s18 = scalar_select %p67_p1, %s741_s11, %s69_s16  }
   0x9   : > { %p810_p5 = por %p80_p2, %p79_p0  ;;  %p814_p6 = por %p86_p4, %p85_p3 }
   0xa   : > { %p600_p7 = scmp.ge.s32.totalorder %s745_s12, 1  ;;  %p114_p8 = scmp.lt.s32.totalorder %s745_s12, 4 }
   0xc   : > { %p115_p9 = pnand %p600_p7, %p114_p8 }
   0xd   : > { %p135_p10 = scmp.lt.s32.totalorder (!%p115_p9), %s793_s13, 2  ;;  %s132_s29 = sand.u32 (!%p115_p9), 1, %s737_s10  }
   0xe   : > { %118 = sbr.rel (%p115_p9) target bundleno = 303 (0x12f), region = 28  ;;  %s601_s30 = sshll.u32 (!%p115_p9), %s132_s29, 3 }
   0xf   : > { %s622_s3 = sshll.u32 (!%p115_p9), %s793_s13, 3  ;;  %s134_s7 = scalar_lea.vmem (!%p115_p9), [#allocation2], %s601_s30 }
  0x10   : > { %s533_s6 = scalar_lea.hbm (!%p115_p9), %s1302_s2, %s622_s3  ;;  %s535_s8 = sshll.u32 (!%p115_p9), %s134_s7, 4  ;;  %s536_s8 = int_to_ptr.vmem [resolvable:$true] %s535_s8 }
  0x11   : > { %s537_s14 = sshll.u32 (!%p115_p9), %s533_s6, 4  ;;  %s523_s16 = scalar_lea.sflag (!%p115_p9), [#allocation3], %s132_s29  ;;  %s538_s14 = int_to_ptr.hbm [resolvable:$true] %s537_s14 }
  0x12   : > { %s697_s17 = sshra.s32 (!%p115_p9), %s538_s14, 4  ;;  %s703_s23 = scalar_lea.hbm (!%p115_p9), %s1302_s2, 24  ;;  %s698_s17 = int_to_ptr.hbm [resolvable:$true] %s697_s17 }
  0x13   : > { %v211_v0 = vld [vmem:[%s1301_s1 + $0x78] sm:$0xff]  ;;  %v747_v1 = vmov 3   ;;  %v748_v2 = vmov 0   ;;  %v210_v3 = vld [vmem:[%s1301_s1 + $0x70] sm:$0xff]  ;;  %s136_s25 = scalar_select %p135_p10, %s793_s13, 2  ;;  %v749_v4 = vmov 6  }
  0x14   : > { %676 = vset.pattern.permute.xlu1 %v747_v1  ;;  %674 = vset.pattern.permute.xlu0 %v748_v2  ;;  %v209_v5 = vld [vmem:[%s1301_s1 + $0x68] sm:$0xff]  ;;  %v243_v6 = vld [vmem:[%s1301_s1 + $0x178] sm:$0xff]  ;;  %v208_v7 = vld [vmem:[%s1301_s1 + $0x60] sm:$0xff]  ;;  %v750_v23 = vmov 1   ;;  %v751_v24 = vmov 2   ;;  %v752_v28 = vmov 4   ;;  %p704_p0 = scmp.lt.s32.totalorder %s698_s17, %s1302_s2 }
  0x15   : > { %678 = vset.pattern.permute.xlu2 %v749_v4  ;;  %340 = vmatpush.msra.mxu0 %v211_v0  ;;  %s602_s28 = sshll.u32 %s136_s25, 3  ;;  %v259_v8 = vld [vmem:[%s1301_s1 + $0x1f8] sm:$0xff]  ;;  %v242_v10 = vld [vmem:[%s1301_s1 + $0x170] sm:$0xff]  ;;  %v241_v14 = vld [vmem:[%s1301_s1 + $0x168] sm:$0xff]  ;;  %v753_v38 = vmov 7   ;;  %v754_v39 = vmov 8  }
  0x16   : > { %s138_s5 = scalar_lea.vmem %s1300_s0, %s602_s28  ;;  %380 = vmatpush.msra.mxu2 %v243_v6  ;;  %400 = vmatpush.msra.mxu3 %v259_v8  ;;  %v227_v11 = vld [vmem:[%s1301_s1 + $0xf8] sm:$0xff]  ;;  %v258_v13 = vld [vmem:[%s1301_s1 + $0x1f0] sm:$0xff]  ;;  %v257_v17 = vld [vmem:[%s1301_s1 + $0x1e8] sm:$0xff]  ;;  %v755_v43 = vmov 5   ;;  %vm520_vm9 = vcmask 228352   ;;  %s699_s13 = scalar_lea.hbm %s698_s17, 8 }
  0x17   : > { %341 = vmatpush.msra.mxu0 %v210_v3  ;;  %v843_v9 = vld [vmem:[%s138_s5] sm:$0xff]  ;;  %v207_v12 = vld [vmem:[%s1301_s1 + $0x58] sm:$0xff]  ;;  %v226_v15 = vld [vmem:[%s1301_s1 + $0xf0] sm:$0xff]  ;;  %360 = vmatpush.msra.mxu1 %v227_v11  ;;  %p700_p11 = scmp.ne.s32.totalorder %s698_s17, %s699_s13  ;;  %p705_p1 = scmp.lt.s32.totalorder %s703_s23, %s699_s13 }
  0x18   : > { %161 = vperm.xlu1 %676, %v843_v9   ;;  %143 = vperm.xlu0 %674, %v843_v9   ;;  %v206_v16 = vld [vmem:[%s1301_s1 + $0x50] sm:$0xff]  ;;  %v240_v18 = vld [vmem:[%s1301_s1 + $0x160] sm:$0xff]  ;;  %v225_v19 = vld [vmem:[%s1301_s1 + $0xe8] sm:$0xff] }
  0x19   : > { %342 = vmatpush.msra.mxu0 %v209_v5  ;;  %179 = vperm.xlu2 %678, %v843_v9   ;;  %v205_v20 = vld [vmem:[%s1301_s1 + $0x48] sm:$0xff]  ;;  %v256_v21 = vld [vmem:[%s1301_s1 + $0x1e0] sm:$0xff]  ;;  %v239_v25 = vld [vmem:[%s1301_s1 + $0x158] sm:$0xff]  ;;  %p701_p12 = pnand %p700_p11, %p810_p5  ;;  %p706_p2 = por %p705_p1, %p704_p0 }
  0x1a   : > { %381 = vmatpush.msra.mxu2 %v242_v10  ;;  %401 = vmatpush.msra.mxu3 %v258_v13  ;;  %v204_v22 = vld [vmem:[%s1301_s1 + $0x40] sm:$0xff]  ;;  %v203_v26 = vld [vmem:[%s1301_s1 + $0x38] sm:$0xff]  ;;  %v238_v29 = vld [vmem:[%s1301_s1 + $0x150] sm:$0xff] }
  0x1b   : > { %343 = vmatpush.msra.mxu0 %v208_v7  ;;  %361 = vmatpush.msra.mxu1 %v226_v15  ;;  %v224_v27 = vld [vmem:[%s1301_s1 + $0xe0] sm:$0xff]  ;;  %v255_v30 = vld [vmem:[%s1301_s1 + $0x1d8] sm:$0xff]  ;;  %v202_v31 = vld [vmem:[%s1301_s1 + $0x30] sm:$0xff]  ;;  %p702_p13 = pneg %p701_p12 }
  0x1c   : > { %382 = vmatpush.msra.mxu2 %v241_v14  ;;  %402 = vmatpush.msra.mxu3 %v257_v17  ;;  %v223_v32 = vld [vmem:[%s1301_s1 + $0xd8] sm:$0xff]  ;;  %v237_v33 = vld [vmem:[%s1301_s1 + $0x148] sm:$0xff]  ;;  %v254_v34 = vld [vmem:[%s1301_s1 + $0x1d0] sm:$0xff] }
  0x1d   : > { %344 = vmatpush.msra.mxu0 %v207_v12  ;;  %362 = vmatpush.msra.mxu1 %v225_v19  ;;  %v201_v35 = vld [vmem:[%s1301_s1 + $0x28] sm:$0xff]  ;;  %v222_v36 = vld [vmem:[%s1301_s1 + $0xd0] sm:$0xff]  ;;  %v200_v37 = vld [vmem:[%s1301_s1 + $0x20] sm:$0xff]  ;;  %p707_p3 = pnand %p706_p2, %p702_p13 }
  0x1e   : > { %383 = vmatpush.msra.mxu2 %v240_v18  ;;  %403 = vmatpush.msra.mxu3 %v256_v21  ;;  %v236_v40 = vld [vmem:[%s1301_s1 + $0x140] sm:$0xff]  ;;  %v199_v41 = vld [vmem:[%s1301_s1 + $0x18] sm:$0xff]  ;;  %v253_v42 = vld [vmem:[%s1301_s1 + $0x1c8] sm:$0xff] }
  0x1f   : > { %345 = vmatpush.msra.mxu0 %v206_v16  ;;  %363 = vmatpush.msra.mxu1 %v224_v27  ;;  %v221_v44 = vld [vmem:[%s1301_s1 + $0xc8] sm:$0xff]  ;;  %v235_v45 = vld [vmem:[%s1301_s1 + $0x138] sm:$0xff]  ;;  %v198_v46 = vld [vmem:[%s1301_s1 + $0x10] sm:$0xff] }
  0x20   : > { %677 = vset.pattern.permute.xlu1 %v750_v23  ;;  %675 = vset.pattern.permute.xlu0 %v751_v24  ;;  %v252_v47 = vld [vmem:[%s1301_s1 + $0x1c0] sm:$0xff]  ;;  %v234_v49 = vld [vmem:[%s1301_s1 + $0x130] sm:$0xff]  ;;  %v197_v50 = vld [vmem:[%s1301_s1 + $0x8] sm:$0xff] }
  0x21   : > { %346 = vmatpush.msra.mxu0 %v205_v20  ;;  %149 = vperm.xlu1 %677, %v843_v9   ;;  %v220_v48 = vld [vmem:[%s1301_s1 + $0xc0] sm:$0xff]  ;;  %v251_v51 = vld [vmem:[%s1301_s1 + $0x1b8] sm:$0xff]  ;;  %v233_v53 = vld [vmem:[%s1301_s1 + $0x128] sm:$0xff] }
  0x22   : > { %155 = vperm.xlu0 %675, %v843_v9   ;;  %679 = vset.pattern.permute.xlu2 %v752_v28  ;;  %v219_v52 = vld [vmem:[%s1301_s1 + $0xb8] sm:$0xff]  ;;  %v196_v54 = vld [vmem:[%s1301_s1] sm:$0xff]  ;;  %v250_v55 = vld [vmem:[%s1301_s1 + $0x1b0] sm:$0xff] }
  0x23   : > { %347 = vmatpush.msra.mxu0 %v204_v22  ;;  %167 = vperm.xlu2 %679, %v843_v9   ;;  %v275_v56 = vld [vmem:[%s1301_s1 + $0x278] sm:$0xff]  ;;  %v218_v57 = vld [vmem:[%s1301_s1 + $0xb0] sm:$0xff]  ;;  %v232_v58 = vld [vmem:[%s1301_s1 + $0x120] sm:$0xff] }
  0x24   : > { %384 = vmatpush.msra.mxu2 %v239_v25  ;;  %404 = vmatpush.msra.mxu3 %v255_v30  ;;  %v249_v59 = vld [vmem:[%s1301_s1 + $0x1a8] sm:$0xff]  ;;  %v274_v60 = vld [vmem:[%s1301_s1 + $0x270] sm:$0xff]  ;;  %v231_v62 = vld [vmem:[%s1301_s1 + $0x118] sm:$0xff] }
  0x25   : > { %348 = vmatpush.msra.mxu0 %v203_v26  ;;  %364 = vmatpush.msra.mxu1 %v223_v32  ;;  %v217_v61 = vld [vmem:[%s1301_s1 + $0xa8] sm:$0xff]  ;;  %v248_v63 = vld [vmem:[%s1301_s1 + $0x1a0] sm:$0xff]  ;;  %v230_v2 = vld [vmem:[%s1301_s1 + $0x110] sm:$0xff] }
  0x26   : > { %385 = vmatpush.msra.mxu2 %v238_v29  ;;  %405 = vmatpush.msra.mxu3 %v254_v34  ;;  %v273_v0 = vld [vmem:[%s1301_s1 + $0x268] sm:$0xff]  ;;  %v216_v1 = vld [vmem:[%s1301_s1 + $0xa0] sm:$0xff]  ;;  %v247_v3 = vld [vmem:[%s1301_s1 + $0x198] sm:$0xff] }
  0x27   : > { %349 = vmatpush.msra.mxu0 %v202_v31  ;;  %365 = vmatpush.msra.mxu1 %v222_v36  ;;  %v272_v4 = vld [vmem:[%s1301_s1 + $0x260] sm:$0xff]  ;;  %v215_v5 = vld [vmem:[%s1301_s1 + $0x98] sm:$0xff]  ;;  %v229_v6 = vld [vmem:[%s1301_s1 + $0x108] sm:$0xff] }
  0x28   : > { %386 = vmatpush.msra.mxu2 %v237_v33  ;;  %406 = vmatpush.msra.mxu3 %v253_v42  ;;  %v246_v7 = vld [vmem:[%s1301_s1 + $0x190] sm:$0xff]  ;;  %v271_v8 = vld [vmem:[%s1301_s1 + $0x258] sm:$0xff]  ;;  %v228_v10 = vld [vmem:[%s1301_s1 + $0x100] sm:$0xff] }
  0x29   : > { %350 = vmatpush.msra.mxu0 %v201_v35  ;;  %680 = vset.pattern.permute.xlu1 %v753_v38  ;;  %v245_v11 = vld [vmem:[%s1301_s1 + $0x188] sm:$0xff]  ;;  %v270_v12 = vld [vmem:[%s1301_s1 + $0x250] sm:$0xff]  ;;  %v307_v13 = vld [vmem:[%s1301_s1 + $0x378] sm:$0xff] }
  0x2a   : > { %682 = vset.pattern.permute.xlu0 %v754_v39  ;;  %185 = vperm.xlu1 %680, %v843_v9   ;;  %v213_v14 = vld [vmem:[%s1301_s1 + $0x88] sm:$0xff]  ;;  %v244_v15 = vld [vmem:[%s1301_s1 + $0x180] sm:$0xff]  ;;  %v306_v17 = vld [vmem:[%s1301_s1 + $0x370] sm:$0xff] }
  0x2b   : > { %191 = vperm.xlu0 %682, %v843_v9   ;;  %681 = vset.pattern.permute.xlu2 %v755_v43  ;;  %v269_v16 = vld [vmem:[%s1301_s1 + $0x248] sm:$0xff]  ;;  %v323_v18 = vld [vmem:[%s1301_s1 + $0x3f8] sm:$0xff]  ;;  %v212_v19 = vld [vmem:[%s1301_s1 + $0x80] sm:$0xff] }
  0x2c   : > { %351 = vmatpush.msra.mxu0 %v200_v37  ;;  %173 = vperm.xlu2 %681, %v843_v9   ;;  %v214_v9 = vld [vmem:[%s1301_s1 + $0x90] sm:$0xff]  ;;  %v268_v20 = vld [vmem:[%s1301_s1 + $0x240] sm:$0xff]  ;;  %v291_v21 = vld [vmem:[%s1301_s1 + $0x2f8] sm:$0xff] }
  0x2d   : > { %387 = vmatpush.msra.mxu2 %v236_v40  ;;  %366 = vmatpush.msra.mxu1 %v221_v44  ;;  %v305_v22 = vld [vmem:[%s1301_s1 + $0x368] sm:$0xff]  ;;  %v322_v23 = vld [vmem:[%s1301_s1 + $0x3f0] sm:$0xff]  ;;  %v267_v24 = vld [vmem:[%s1301_s1 + $0x238] sm:$0xff] }
  0x2e   : > { %352 = vmatpush.msra.mxu0 %v199_v41  ;;  %407 = vmatpush.msra.mxu3 %v252_v47  ;;  %v290_v25 = vld [vmem:[%s1301_s1 + $0x2f0] sm:$0xff]  ;;  %v304_v26 = vld [vmem:[%s1301_s1 + $0x360] sm:$0xff]  ;;  %v321_v27 = vld [vmem:[%s1301_s1 + $0x3e8] sm:$0xff] }
  0x2f   : > { %388 = vmatpush.msra.mxu2 %v235_v45  ;;  %367 = vmatpush.msra.mxu1 %v220_v48  ;;  %v266_v28 = vld [vmem:[%s1301_s1 + $0x230] sm:$0xff]  ;;  %v289_v29 = vld [vmem:[%s1301_s1 + $0x2e8] sm:$0xff]  ;;  %v303_v30 = vld [vmem:[%s1301_s1 + $0x358] sm:$0xff] }
  0x30   : > { %353 = vmatpush.msra.mxu0 %v198_v46  ;;  %408 = vmatpush.msra.mxu3 %v251_v51  ;;  %v320_v31 = vld [vmem:[%s1301_s1 + $0x3e0] sm:$0xff]  ;;  %v265_v32 = vld [vmem:[%s1301_s1 + $0x228] sm:$0xff]  ;;  %v302_v34 = vld [vmem:[%s1301_s1 + $0x350] sm:$0xff] }
  0x31   : > { %389 = vmatpush.msra.mxu2 %v234_v49  ;;  %368 = vmatpush.msra.mxu1 %v219_v52  ;;  %v288_v33 = vld [vmem:[%s1301_s1 + $0x2e0] sm:$0xff]  ;;  %v319_v35 = vld [vmem:[%s1301_s1 + $0x3d8] sm:$0xff]  ;;  %v301_v38 = vld [vmem:[%s1301_s1 + $0x348] sm:$0xff] }
  0x32   : > { %354 = vmatpush.msra.mxu0 %v197_v50  ;;  %409 = vmatpush.msra.mxu3 %v250_v55  ;;  %v264_v36 = vld [vmem:[%s1301_s1 + $0x220] sm:$0xff]  ;;  %v287_v37 = vld [vmem:[%s1301_s1 + $0x2d8] sm:$0xff]  ;;  %v318_v39 = vld [vmem:[%s1301_s1 + $0x3d0] sm:$0xff] }
  0x33   : > { %390 = vmatpush.msra.mxu2 %v233_v53  ;;  %369 = vmatpush.msra.mxu1 %v218_v57  ;;  %v263_v40 = vld [vmem:[%s1301_s1 + $0x218] sm:$0xff]  ;;  %v262_v41 = vld [vmem:[%s1301_s1 + $0x210] sm:$0xff]  ;;  %v261_v42 = vld [vmem:[%s1301_s1 + $0x208] sm:$0xff] }
  0x34   : > { %355 = vmatpush.msra.mxu0 %v196_v54  ;;  %410 = vmatpush.msra.mxu3 %v249_v59  ;;  %v260_v43 = vld [vmem:[%s1301_s1 + $0x200] sm:$0xff]  ;;  %v286_v44 = vld [vmem:[%s1301_s1 + $0x2d0] sm:$0xff]  ;;  %v317_v46 = vld [vmem:[%s1301_s1 + $0x3c8] sm:$0xff] }
  0x35   : > { %391 = vmatpush.msra.mxu2 %v232_v58  ;;  %370 = vmatpush.msra.mxu1 %v217_v61  ;;  %v300_v45 = vld [vmem:[%s1301_s1 + $0x340] sm:$0xff]  ;;  %v285_v47 = vld [vmem:[%s1301_s1 + $0x2c8] sm:$0xff]  ;;  %v299_v48 = vld [vmem:[%s1301_s1 + $0x338] sm:$0xff] }
  0x36   : > { %420 = vmatpush.msrb.mxu0 %v275_v56  ;;  %411 = vmatpush.msra.mxu3 %v248_v63  ;;  %v316_v49 = vld [vmem:[%s1301_s1 + $0x3c0] sm:$0xff]  ;;  %v298_v51 = vld [vmem:[%s1301_s1 + $0x330] sm:$0xff]  ;;  %v315_v52 = vld [vmem:[%s1301_s1 + $0x3b8] sm:$0xff] }
  0x37   : > { %392 = vmatpush.msra.mxu2 %v231_v62  ;;  %371 = vmatpush.msra.mxu1 %v216_v1  ;;  %v284_v50 = vld [vmem:[%s1301_s1 + $0x2c0] sm:$0xff]  ;;  %v283_v53 = vld [vmem:[%s1301_s1 + $0x2b8] sm:$0xff]  ;;  %v297_v54 = vld [vmem:[%s1301_s1 + $0x328] sm:$0xff] }
  0x38   : > { %421 = vmatpush.msrb.mxu0 %v274_v60  ;;  %412 = vmatpush.msra.mxu3 %v247_v3  ;;  %v314_v55 = vld [vmem:[%s1301_s1 + $0x3b0] sm:$0xff]  ;;  %v296_v57 = vld [vmem:[%s1301_s1 + $0x320] sm:$0xff]  ;;  %v313_v58 = vld [vmem:[%s1301_s1 + $0x3a8] sm:$0xff] }
  0x39   : > { %393 = vmatpush.msra.mxu2 %v230_v2  ;;  %372 = vmatpush.msra.mxu1 %v215_v5  ;;  %v282_v56 = vld [vmem:[%s1301_s1 + $0x2b0] sm:$0xff]  ;;  %v281_v59 = vld [vmem:[%s1301_s1 + $0x2a8] sm:$0xff]  ;;  %v295_v60 = vld [vmem:[%s1301_s1 + $0x318] sm:$0xff] }
  0x3a   : > { %422 = vmatpush.msrb.mxu0 %v273_v0  ;;  %413 = vmatpush.msra.mxu3 %v246_v7  ;;  %v312_v61 = vld [vmem:[%s1301_s1 + $0x3a0] sm:$0xff]  ;;  %v294_v63 = vld [vmem:[%s1301_s1 + $0x310] sm:$0xff]  ;;  %v311_v0 = vld [vmem:[%s1301_s1 + $0x398] sm:$0xff] }
  0x3b   : > { %394 = vmatpush.msra.mxu2 %v229_v6  ;;  %373 = vmatpush.msra.mxu1 %v214_v9  ;;  %v280_v62 = vld [vmem:[%s1301_s1 + $0x2a0] sm:$0xff]  ;;  %v279_v1 = vld [vmem:[%s1301_s1 + $0x298] sm:$0xff]  ;;  %v293_v2 = vld [vmem:[%s1301_s1 + $0x308] sm:$0xff] }
  0x3c   : > { %423 = vmatpush.msrb.mxu0 %v272_v4  ;;  %414 = vmatpush.msra.mxu3 %v245_v11  ;;  %v310_v3 = vld [vmem:[%s1301_s1 + $0x390] sm:$0xff]  ;;  %v292_v5 = vld [vmem:[%s1301_s1 + $0x300] sm:$0xff]  ;;  %v309_v6 = vld [vmem:[%s1301_s1 + $0x388] sm:$0xff] }
  0x3d   : > { %395 = vmatpush.msra.mxu2 %v228_v10  ;;  %374 = vmatpush.msra.mxu1 %v213_v14  ;;  %v278_v4 = vld [vmem:[%s1301_s1 + $0x290] sm:$0xff]  ;;  %v277_v7 = vld [vmem:[%s1301_s1 + $0x288] sm:$0xff]  ;;  %v276_v9 = vld [vmem:[%s1301_s1 + $0x280] sm:$0xff]  ;;  %v139_v10 = vlaneseq }
  0x3e   : > { %424 = vmatpush.msrb.mxu0 %v271_v8  ;;  %415 = vmatpush.msra.mxu3 %v244_v15  ;;  %v308_v8 = vld [vmem:[%s1301_s1 + $0x380] sm:$0xff]  ;;  %v339_v15 = vld [vmem:[%s1301_s1 + $0x478] sm:$0xff] }
  0x3f   : > { %460 = vmatpush.msrb.mxu2 %v307_v13  ;;  %375 = vmatpush.msra.mxu1 %v212_v19  ;;  %v337_v19 = vld [vmem:[%s1301_s1 + $0x468] sm:$0xff] }
  0x40   : > { %425 = vmatpush.msrb.mxu0 %v270_v12  ;;  %480 = vmatpush.msrb.mxu3 %v323_v18  ;;  %v140_v12 = vand.u32 127, %v139_v10 }
  0x41   : > { %461 = vmatpush.msrb.mxu2 %v306_v17  ;;  %440 = vmatpush.msrb.mxu1 %v291_v21  ;;  %v338_v17 = vld [vmem:[%s1301_s1 + $0x470] sm:$0xff]  ;;  %v335_v21 = vld [vmem:[%s1301_s1 + $0x458] sm:$0xff] }
  0x42   : > { %426 = vmatpush.msrb.mxu0 %v269_v16  ;;  %481 = vmatpush.msrb.mxu3 %v322_v23  ;;  %v756_v16 = vmov 1.0  }
  0x43   : > { %462 = vmatpush.msrb.mxu2 %v305_v22  ;;  %441 = vmatpush.msrb.mxu1 %v290_v25  ;;  %v333_v25 = vld [vmem:[%s1301_s1 + $0x448] sm:$0xff] }
  0x44   : > { %427 = vmatpush.msrb.mxu0 %v268_v20  ;;  %482 = vmatpush.msrb.mxu3 %v321_v27  ;;  %v336_v20 = vld [vmem:[%s1301_s1 + $0x460] sm:$0xff] }
  0x45   : > { %463 = vmatpush.msrb.mxu2 %v304_v26  ;;  %442 = vmatpush.msrb.mxu1 %v289_v29  ;;  %v332_v27 = vld [vmem:[%s1301_s1 + $0x440] sm:$0xff] }
  0x46   : > { %428 = vmatpush.msrb.mxu0 %v267_v24  ;;  %483 = vmatpush.msrb.mxu3 %v320_v31  ;;  %v334_v24 = vld [vmem:[%s1301_s1 + $0x450] sm:$0xff]  ;;  %v329_v31 = vld [vmem:[%s1301_s1 + $0x428] sm:$0xff] }
  0x47   : > { %464 = vmatpush.msrb.mxu2 %v303_v30  ;;  %443 = vmatpush.msrb.mxu1 %v288_v33  ;;  %v330_v30 = vld [vmem:[%s1301_s1 + $0x430] sm:$0xff]  ;;  %v327_v33 = vld [vmem:[%s1301_s1 + $0x418] sm:$0xff] }
  0x48   : > { %429 = vmatpush.msrb.mxu0 %v266_v28  ;;  %484 = vmatpush.msrb.mxu3 %v319_v35  ;;  %v331_v28 = vld [vmem:[%s1301_s1 + $0x438] sm:$0xff]  ;;  %v325_v35 = vld [vmem:[%s1301_s1 + $0x408] sm:$0xff] }
  0x49   : > { %465 = vmatpush.msrb.mxu2 %v302_v34  ;;  %444 = vmatpush.msrb.mxu1 %v287_v37  ;;  %v326_v34 = vld [vmem:[%s1301_s1 + $0x410] sm:$0xff]  ;;  %v324_v37 = vld [vmem:[%s1301_s1 + $0x400] sm:$0xff] }
  0x4a   : > { %430 = vmatpush.msrb.mxu0 %v265_v32  ;;  %485 = vmatpush.msrb.mxu3 %v318_v39  ;;  %v328_v32 = vld [vmem:[%s1301_s1 + $0x420] sm:$0xff] }
  0x4b   : > { %466 = vmatpush.msrb.mxu2 %v301_v38  ;;  %445 = vmatpush.msrb.mxu1 %v286_v44 }
  0x4c   : > { %431 = vmatpush.msrb.mxu0 %v264_v36  ;;  %486 = vmatpush.msrb.mxu3 %v317_v46 }
  0x4d   : > { %467 = vmatpush.msrb.mxu2 %v300_v45  ;;  %446 = vmatpush.msrb.mxu1 %v285_v47 }
  0x4e   : > { %432 = vmatpush.msrb.mxu0 %v263_v40  ;;  %487 = vmatpush.msrb.mxu3 %v316_v49 }
  0x4f   : > { %468 = vmatpush.msrb.mxu2 %v299_v48  ;;  %447 = vmatpush.msrb.mxu1 %v284_v50 }
  0x50   : > { %433 = vmatpush.msrb.mxu0 %v262_v41  ;;  %488 = vmatpush.msrb.mxu3 %v315_v52 }
  0x51   : > { %469 = vmatpush.msrb.mxu2 %v298_v51  ;;  %448 = vmatpush.msrb.mxu1 %v283_v53 }
  0x52   : > { %434 = vmatpush.msrb.mxu0 %v261_v42  ;;  %489 = vmatpush.msrb.mxu3 %v314_v55 }
  0x53   : > { %470 = vmatpush.msrb.mxu2 %v297_v54  ;;  %449 = vmatpush.msrb.mxu1 %v282_v56 }
  0x54   : > { %435 = vmatpush.msrb.mxu0 %v260_v43  ;;  %490 = vmatpush.msrb.mxu3 %v313_v58 }
  0x55   : > { %471 = vmatpush.msrb.mxu2 %v296_v57  ;;  %450 = vmatpush.msrb.mxu1 %v281_v59 }
  0x56   : > { %491 = vmatpush.msrb.mxu3 %v312_v61 }
  0x57   : > { %472 = vmatpush.msrb.mxu2 %v295_v60  ;;  %451 = vmatpush.msrb.mxu1 %v280_v62 }
  0x58   : > { %492 = vmatpush.msrb.mxu3 %v311_v0 }
  0x59   : > { %473 = vmatpush.msrb.mxu2 %v294_v63  ;;  %452 = vmatpush.msrb.mxu1 %v279_v1 }
  0x5a   : > { %493 = vmatpush.msrb.mxu3 %v310_v3 }
  0x5b   : > { %474 = vmatpush.msrb.mxu2 %v293_v2  ;;  %453 = vmatpush.msrb.mxu1 %v278_v4 }
  0x5c   : > { %494 = vmatpush.msrb.mxu3 %v309_v6 }
  0x5d   : > { %475 = vmatpush.msrb.mxu2 %v292_v5  ;;  %454 = vmatpush.msrb.mxu1 %v277_v7 }
  0x5e   : > { %495 = vmatpush.msrb.mxu3 %v308_v8 }
  0x5f   : > { %455 = vmatpush.msrb.mxu1 %v276_v9 }
  0x73   : > { %v180_v11 = vpop.permute.xlu2 %179 }
  0x74   : > { %vm181_vm6 = vcmp.eq.s32.totalorder %v140_v12, %v180_v11 }
  0x7d   : > { %v168_v18 = vpop.permute.xlu2 %167 }
  0x7e   : > { %vm169_vm2 = vcmp.eq.s32.totalorder %v140_v12, %v168_v18 }
  0x86   : > { %v174_v26 = vpop.permute.xlu2 %173 }
  0x87   : > { %vm175_vm5 = vcmp.eq.s32.totalorder %v140_v12, %v174_v26 }
  0x8a   : > { %v144_v13 = vpop.permute.xlu0 %143  ;;  %v162_v14 = vpop.permute.xlu1 %161 }
  0x8b   : > { %vm145_vm0 = vcmp.eq.s32.totalorder %v140_v12, %v144_v13  ;;  %vm163_vm1 = vcmp.eq.s32.totalorder %v140_v12, %v162_v14 }
  0x8c   : > { %612 = vmatmul.msk.f32.vlgmr.msra.gmra.mxu0 %vm145_vm0, %v756_v16  ;;  %615 = vmatmul.msk.f32.vlgmr.msra.gmra.mxu3 %vm163_vm1, %v756_v16 }
  0x8d   : > { %500 = vmatpush.msra.mxu0 %v339_v15 }
  0x8f   : > { %501 = vmatpush.msra.mxu0 %v338_v17 }
  0x91   : > { %502 = vmatpush.msra.mxu0 %v337_v19 }
  0x93   : > { %503 = vmatpush.msra.mxu0 %v336_v20  ;;  %v150_v22 = vpop.permute.xlu1 %149 }
  0x94   : > { %v156_v23 = vpop.permute.xlu0 %155  ;;  %vm151_vm3 = vcmp.eq.s32.totalorder %v140_v12, %v150_v22  ;;  %616 = vmatmul.msk.f32.vlgmr.msrb.gmra.mxu0 %vm169_vm2, %v756_v16 }
  0x95   : > { %vm157_vm4 = vcmp.eq.s32.totalorder %v140_v12, %v156_v23  ;;  %504 = vmatpush.msra.mxu0 %v335_v21  ;;  %613 = vmatmul.msk.f32.vlgmr.msra.gmra.mxu1 %vm151_vm3, %v756_v16 }
  0x96   : > { %614 = vmatmul.msk.f32.vlgmr.msra.gmra.mxu2 %vm157_vm4, %v756_v16 }
  0x97   : > { %505 = vmatpush.msra.mxu0 %v334_v24 }
  0x99   : > { %506 = vmatpush.msra.mxu0 %v333_v25 }
  0x9b   : > { %507 = vmatpush.msra.mxu0 %v332_v27 }
  0x9c   : > { %v186_v29 = vpop.permute.xlu1 %185 }
  0x9d   : > { %508 = vmatpush.msra.mxu0 %v331_v28  ;;  %vm187_vm7 = vcmp.eq.s32.totalorder %v140_v12, %v186_v29  ;;  %617 = vmatmul.msk.f32.vlgmr.msrb.gmra.mxu1 %vm175_vm5, %v756_v16  ;;  %v192_v36 = vpop.permute.xlu0 %191 }
  0x9e   : > { %618 = vmatmul.msk.f32.vlgmr.msrb.gmra.mxu2 %vm181_vm6, %v756_v16  ;;  %619 = vmatmul.msk.f32.vlgmr.msrb.gmra.mxu3 %vm187_vm7, %v756_v16  ;;  %vm193_vm8 = vcmp.eq.s32.totalorder %v140_v12, %v192_v36 }
  0x9f   : > { %509 = vmatpush.msra.mxu0 %v330_v30 }
  0xa1   : > { %510 = vmatpush.msra.mxu0 %v329_v31 }
  0xa3   : > { %511 = vmatpush.msra.mxu0 %v328_v32 }
  0xa5   : > { %512 = vmatpush.msra.mxu0 %v327_v33 }
  0xa7   : > { %513 = vmatpush.msra.mxu0 %v326_v34 }
  0xa9   : > { %514 = vmatpush.msra.mxu0 %v325_v35 }
  0xab   : > { %515 = vmatpush.msra.mxu0 %v324_v37 }
  0xac   : > { %620 = vmatmul.msk.f32.vlgmr.msra.gmra.mxu0 %vm193_vm8, %v756_v16 }
 0x109   : > { %v357_v38 = vpop.f32.mrf.mxu0 }
 0x10f   : > { %v417_v43 = vpop.f32.mrf.mxu3 }
 0x111   : > { %v437_v45 = vpop.f32.mrf.mxu0 }
 0x112   : > { %v377_v39 = vpop.f32.mrf.mxu1 }
 0x113   : > { %v378_v40 = vadd.f32 %v377_v39, %v357_v38 }
 0x119   : > { %v397_v41 = vpop.f32.mrf.mxu2 }
 0x11a   : > { %v398_v42 = vadd.f32 %v397_v41, %v378_v40  ;;  %v457_v46 = vpop.f32.mrf.mxu1 }
 0x11c   : > { %v418_v44 = vadd.f32 %v417_v43, %v398_v42 }
 0x11e   : > { %v438_v47 = vadd.f32 %v437_v45, %v418_v44 }
 0x120   : > { %v458_v48 = vadd.f32 %v457_v46, %v438_v47 }
 0x121   : > { %v477_v49 = vpop.f32.mrf.mxu2  ;;  %v497_v51 = vpop.f32.mrf.mxu3 }
 0x122   : > { %v478_v50 = vadd.f32 %v477_v49, %v458_v48 }
 0x124   : > { %v498_v52 = vadd.f32 %v497_v51, %v478_v50 }
 0x129   : > { %v517_v53 = vpop.f32.mrf.mxu0 }
 0x12a   : > { %v518_v54 = vadd.f32 %v517_v53, %v498_v52 }
 0x12c   : > { %521 = vst.msk [vmem:[%s134_s7] sm:$0xff] %vm520_vm9, %v518_v54 }
 0x12d   : > { %710 = shalt.err (!%p707_p3)
}
 0x12e   : > { %625 = dma.vmem_to_hbm [thread:$0]  (%p810_p5), %s536_s8, 128, %s538_s14, %s523_s16  }
 0x12f PF: > { %p631_p4 = scmp.ge.s32.totalorder %s745_s12, 2  ;;  %s549_s26 = sand.u32 1, %s733_s9  }
 0x130   : > { %s550_s27 = scalar_lea.sflag [#allocation3], %s549_s26 }
 0x131   : > { %p628_p7 = pnand %p631_p4, %p814_p6 }
 0x133   : > { %p629_p8 = pneg %p628_p7 }
 0x135   : > { %728 = dma.done.wait (%p629_p8), %s550_s27, 128  }
 0x136   : > { %730 = vsyncadd (%p629_p8), %s550_s27, 4294967168  ;;  %p12_p9 = scmp.ge.s32.totalorder %s797_s15, 5   ;;  %s1305_s9 = smov %s737_s10 }
 0x137   : > { %s1306_s10 = smov %s741_s11  ;;  %s1307_s11 = smov %s808_s18 }
 0x138   : > { %s1308_s12 = smov %s797_s15  ;;  %14 = sbr.rel (!%p12_p9) target bundleno = 3 (0x3), region = 63 }
 0x13d   :  { %556 = vsyncpa [#allocation3], 1 }
 0x13e   :  { %558 = vsyncpa [#allocation3 + $0x1], 1 }

</bundles_post_ra>
